<compile_context>
chip_gen: v5e
topology: v5e:2x2
jax: 0.10.0
libtpu: 0.0.40
codegen_flags: <defaults>
</compile_context>

<pallas_src>
import functools
import math

import jax
import jax.numpy as jnp
from jax import lax
from jax.experimental import pallas as pl
from jax.experimental.pallas import tpu as pltpu
import numpy as np


def _round_up(x: int, m: int) -> int:
    return (x + m - 1) // m * m


def _largest_divisor_tile(total: int, req: int, step: int) -> int:
    """Largest multiple of `step` that divides `total` and is <= min(req, total)."""
    req = max(step, min(req, total))
    req = (req // step) * step
    t = req
    while total % t:
        t -= step
    return t


def _ntxent_kernel(a_ref, b_ref, c_ref,          # inputs
                   la_ref, lb_ref,               # outputs (per-row losses, both halves)
                   acc_a, acc_b,                 # VMEM scratch (elementwise accumulators)
                   *, tm: int, tk: int, np_half: int, n_valid: int,
                   mask_pad_cols: bool, mxu_dtype):
    i = pl.program_id(0)
    j = pl.program_id(1)
    nj = pl.num_programs(1)

    @pl.when(j == 0)
    def _init():
        acc_a[...] = jnp.zeros_like(acc_a)
        acc_b[...] = jnp.zeros_like(acc_b)

    a = a_ref[...]      # (TM, D) L2-normalized z_i rows * 1/sqrt(T), f32 (resident over j)
    b = b_ref[...]      # (TM, D) L2-normalized z_j rows * 1/sqrt(T), f32 (resident over j)
    c = c_ref[...]      # (TK, D) normalized/scaled columns of cat([z_i, z_j]) (streamed)

    if mxu_dtype is not None:
        a_m = a.astype(mxu_dtype)
        b_m = b.astype(mxu_dtype)
        c_m = c.astype(mxu_dtype)
    else:
        a_m, b_m, c_m = a, b, c

    # Contract the feature dims directly (no transpose of the column tile):
    # both operands carry 1/sqrt(T), so these are sim/T tiles of shape (TM, TK).
    dims = (((1,), (1,)), ((), ()))
    e_a = jnp.exp(lax.dot_general(a_m, c_m, dims, preferred_element_type=jnp.float32))
    e_b = jnp.exp(lax.dot_general(b_m, c_m, dims, preferred_element_type=jnp.float32))

    # Exclude the self-similarity term exactly where it lands (and padded columns).
    # Pure VPU work that rides under the EUP-bound exp; exact (no subtraction of the
    # largest term afterwards => no cancellation, no f32/bf16 path mismatch).
    row_g = i * tm + lax.broadcasted_iota(jnp.int32, (tm, tk), 0)
    col_g = j * tk + lax.broadcasted_iota(jnp.int32, (tm, tk), 1)
    drop_a = col_g == row_g                     # z_i rows: self at global column r
    drop_b = col_g == row_g + np_half           # z_j rows: self at global column Np + r
    if mask_pad_cols:
        pad_col = jnp.logical_or(
            jnp.logical_and(col_g >= n_valid, col_g < np_half),
            col_g >= np_half + n_valid)
        drop_a = jnp.logical_or(drop_a, pad_col)
        drop_b = jnp.logical_or(drop_b, pad_col)

    # Elementwise accumulation (VPU); single cross-lane reduction only at finalize.
    acc_a[...] += jnp.where(drop_a, 0.0, e_a)
    acc_b[...] += jnp.where(drop_b, 0.0, e_b)

    @pl.when(j == nj - 1)
    def _finalize():
        # Both operands carry 1/sqrt(T): sum(a*b) == (zn_i . zn_j) / T == pos / T.
        pos_t = jnp.sum(a * b, axis=1, keepdims=True)             # (TM, 1)
        denom_a = jnp.sum(acc_a[...], axis=1, keepdims=True)
        denom_b = jnp.sum(acc_b[...], axis=1, keepdims=True)
        la_ref[...] = jnp.log(denom_a) - pos_t
        lb_ref[...] = jnp.log(denom_b) - pos_t


def _vmem_capacity_bytes() -> int:
    try:
        cap = getattr(pltpu.get_tpu_info(), "vmem_capacity_bytes", None)
        if cap:
            return int(cap)
    except Exception:
        pass
    return 64 * 1024 * 1024   # conservative (v7x-sized) fallback


def ntxent(z_i, z_j, weights=None, temperature: float = 1.0,
           tm: int = 256, tk: int = 256, use_bf16_matmul: bool = False):
    """Pallas TPU implementation of NTXent.forward (cosine-sim NT-Xent loss)."""
    n, d = z_i.shape
    assert z_j.shape == (n, d)

    # --- One-shot wrapper preprocessing: L2-normalize and fold 1/sqrt(T) in.
    scale = 1.0 / math.sqrt(float(temperature))

    def _norm(z):
        z = z.astype(jnp.float32)
        ssq = jnp.sum(z * z, axis=1, keepdims=True)
        return z * lax.rsqrt(jnp.maximum(ssq, 1e-16)) * scale   # z/max(||z||,1e-8) * s

    zi_n = _norm(z_i)
    zj_n = _norm(z_j)

    # --- Tile sizing: TM (resident rows) decoupled from TK (streamed columns).
    step = 16 if use_bf16_matmul else 8          # sublane packing for the streamed dtype
    np0 = _round_up(n, step)
    tm_req = max(step, (int(tm) // step) * step)
    tk_req = max(step, (int(tk) // step) * step)
    cand = _largest_divisor_tile(np0, tm_req, step)
    if 2 * cand >= min(tm_req, np0):
        tm_eff, np_half = cand, np0              # minimal padding, big-enough row tile
    else:
        tm_eff = min(tm_req, np0)
        np_half = _round_up(n, tm_eff)           # accept row padding to keep TM large
    tk_eff = _largest_divisor_tile(2 * np_half, tk_req, step)
    pad = np_half - n

    if pad:
        zi_n = jnp.pad(zi_n, ((0, pad), (0, 0)))   # padded rows are exact zero vectors
        zj_n = jnp.pad(zj_n, ((0, pad), (0, 0)))
    # Single fused operand: rows for both halves AND the streamed columns.
    zc = jnp.concatenate([zi_n, zj_n], axis=0)                              # (2*Np, D)
    zc_cols = zc.astype(jnp.bfloat16) if use_bf16_matmul else zc            # halve HBM stream

    half_blocks = np_half // tm_eff
    grid = (half_blocks, (2 * np_half) // tk_eff)

    kernel = functools.partial(
        _ntxent_kernel,
        tm=tm_eff, tk=tk_eff, np_half=np_half, n_valid=n,
        mask_pad_cols=(pad > 0),
        mxu_dtype=jnp.bfloat16 if use_bf16_matmul else None,
    )

    col_bytes = 2 if use_bf16_matmul else 4
    est = (2 * 2 * tm_eff * d * 4              # two resident row tiles, double-buffered
           + 2 * tk_eff * d * col_bytes        # streamed column tile, double-buffered
           + 2 * tm_eff * tk_eff * 4           # elementwise denominator accumulators
           + 6 * tm_eff * tk_eff * 4           # exp/mask temporaries headroom
           + 8 * tm_eff * 4)                   # per-row loss outputs
    vmem_cap = _vmem_capacity_bytes()          # 128 MiB v5e/v6e, 64 MiB v7x
    vmem_limit = int(min(max(2 * est, 32 * 1024 * 1024), (vmem_cap * 3) // 4))

    la, lb = pl.pallas_call(
        kernel,
        out_shape=(jax.ShapeDtypeStruct((np_half, 1), jnp.float32),
                   jax.ShapeDtypeStruct((np_half, 1), jnp.float32)),
        grid_spec=pltpu.PrefetchScalarGridSpec(
            num_scalar_prefetch=0,
            grid=grid,
            in_specs=[
                pl.BlockSpec((tm_eff, d), lambda i, j: (i, 0)),                      # z_i rows
                pl.BlockSpec((tm_eff, d), lambda i, j, hb=half_blocks: (i + hb, 0)), # z_j rows
                pl.BlockSpec((tk_eff, d), lambda i, j: (j, 0)),                      # streamed cols
            ],
            out_specs=(
                pl.BlockSpec((tm_eff, 1), lambda i, j: (i, 0)),   # losses for z_i rows
                pl.BlockSpec((tm_eff, 1), lambda i, j: (i, 0)),   # losses for z_j rows
            ),
            scratch_shapes=[
                pltpu.VMEM((tm_eff, tk_eff), jnp.float32),   # denom accumulator (z_i rows)
                pltpu.VMEM((tm_eff, tk_eff), jnp.float32),   # denom accumulator (z_j rows)
            ],
        ),
        compiler_params=pltpu.CompilerParams(
            # Row blocks shard across TensorCores; column axis is the reduction.
            # TODO(synk): on v7x verify both TCs are busy (xprof); if one is idle,
            # switch axis 0 to pltpu.CORE_PARALLEL or an explicit core_map split.
            dimension_semantics=("parallel", "arbitrary"),
            vmem_limit_bytes=vmem_limit,
        ),
    )(zc, zc, zc_cols)

    # Tiny final reduction in the wrapper (order matches the reference: z_i rows then z_j rows).
    all_losses = jnp.concatenate([la[:n, 0], lb[:n, 0]], axis=0)
    if weights is None:
        return jnp.mean(all_losses)
    w = jnp.tile(weights.astype(jnp.float32), 2)                  # weights.repeat(2)
    return jnp.sum(all_losses * w) / jnp.sum(w)


def _ntxent_ref(z_i, z_j, weights=None, temperature: float = 1.0):
    """Pure-JAX reference mirroring the PyTorch module."""
    n = z_i.shape[0]
    z = jnp.concatenate([z_i, z_j], axis=0)
    norm = jnp.maximum(jnp.linalg.norm(z, axis=1, keepdims=True), 1e-8)
    zn = z / norm
    sim = zn @ zn.T
    sim_ij = jnp.diagonal(sim, offset=n)
    sim_ji = jnp.diagonal(sim, offset=-n)
    positives = jnp.concatenate([sim_ij, sim_ji], axis=0)
    mask = (~jnp.eye(2 * n, dtype=bool)).astype(jnp.float32)
    numerator = jnp.exp(positives / temperature)
    denominator = mask * jnp.exp(sim / temperature)
    all_losses = -jnp.log(numerator / jnp.sum(denominator, axis=1))
    if weights is not None:
        w = jnp.tile(weights, 2)
        return jnp.sum(all_losses * w) / jnp.sum(w)
    return jnp.mean(all_losses)


if __name__ == "__main__":
    key = jax.random.PRNGKey(0)
    k1, k2, k3 = jax.random.split(key, 3)
    N, D = 20, 32
    z_i = jax.random.normal(k1, (N, D), dtype=jnp.float32)
    z_j = jax.random.normal(k2, (N, D), dtype=jnp.float32)
    weights = jax.random.uniform(k3, (N,), dtype=jnp.float32) + 0.1

    # Small decoupled tiles => multi-block (3, 3) grid with padded rows/columns,
    # exercising accumulation, diagonal masking across blocks, and pad masking.
    loss = ntxent(z_i, z_j, temperature=0.5, tm=8, tk=16)
    jax.block_until_ready(loss)
    ref = _ntxent_ref(z_i, z_j, temperature=0.5)
    np.testing.assert_allclose(np.asarray(loss), np.asarray(ref), rtol=2e-5, atol=2e-5)

    # Weighted path with default tiles (single block per half, fused column op).
    loss_w = ntxent(z_i, z_j, weights=weights, temperature=0.5)
    jax.block_until_ready(loss_w)
    ref_w = _ntxent_ref(z_i, z_j, weights=weights, temperature=0.5)
    np.testing.assert_allclose(np.asarray(loss_w), np.asarray(ref_w), rtol=2e-5, atol=2e-5)

    print("KERNEL_OK")
</pallas_src>

<mosaic_0001>
module attributes {stable_mosaic.version = 11 : i64} {
  func.func @_ntxent_kernel(%arg0: i32, %arg1: i32, %arg2: memref<8x32xf32, #tpu.memory_space<vmem>>, %arg3: memref<8x32xf32, #tpu.memory_space<vmem>>, %arg4: memref<16x32xf32, #tpu.memory_space<vmem>>, %arg5: memref<8x1xf32, #tpu.memory_space<vmem>>, %arg6: memref<8x1xf32, #tpu.memory_space<vmem>>, %arg7: memref<8x16xf32, #tpu.memory_space<vmem>>, %arg8: memref<8x16xf32, #tpu.memory_space<vmem>>) attributes {dimension_semantics = [#tpu.dimension_semantics<parallel>, #tpu.dimension_semantics<arbitrary>], iteration_bounds = array<i64: 3, 3>, scalar_prefetch = 0 : i64, scratch_operands = 2 : i64, tpu.core_type = #tpu.core_type<tc>, window_params = [{transform_indices = @transform_0, window_bounds = array<i64: 8, 32>}, {transform_indices = @transform_1, window_bounds = array<i64: 8, 32>}, {transform_indices = @transform_2, window_bounds = array<i64: 16, 32>}, {transform_indices = @transform_3, window_bounds = array<i64: 8, 1>}, {transform_indices = @transform_4, window_bounds = array<i64: 8, 1>}]} {
    %c0_i32 = arith.constant 0 : i32
    %0 = arith.cmpi eq, %arg1, %c0_i32 : i32
    %1 = arith.extui %0 : i1 to i32
    %c0_i32_0 = arith.constant 0 : i32
    %2 = arith.cmpi ne, %1, %c0_i32_0 : i32
    scf.if %2 {
      %cst_19 = arith.constant 0.000000e+00 : f32
      %45 = vector.broadcast %cst_19 : f32 to vector<8x16xf32>
      %c0_20 = arith.constant 0 : index
      %c0_21 = arith.constant 0 : index
      %46 = vector.load %arg7[%c0_20, %c0_21] : memref<8x16xf32, #tpu.memory_space<vmem>>, vector<8x16xf32>
      tpu.vector_store %arg7[%c0_20, %c0_21], %45 {strides = array<i32>} : memref<8x16xf32, #tpu.memory_space<vmem>>, vector<8x16xf32>,
      %cst_22 = arith.constant 0.000000e+00 : f32
      %47 = vector.broadcast %cst_22 : f32 to vector<8x16xf32>
      %c0_23 = arith.constant 0 : index
      %c0_24 = arith.constant 0 : index
      %48 = vector.load %arg8[%c0_23, %c0_24] : memref<8x16xf32, #tpu.memory_space<vmem>>, vector<8x16xf32>
      tpu.vector_store %arg8[%c0_23, %c0_24], %47 {strides = array<i32>} : memref<8x16xf32, #tpu.memory_space<vmem>>, vector<8x16xf32>,
    } else {
    }
    %c0 = arith.constant 0 : index
    %c0_1 = arith.constant 0 : index
    %3 = vector.load %arg2[%c0, %c0_1] : memref<8x32xf32, #tpu.memory_space<vmem>>, vector<8x32xf32>
    %c0_2 = arith.constant 0 : index
    %c0_3 = arith.constant 0 : index
    %4 = vector.load %arg3[%c0_2, %c0_3] : memref<8x32xf32, #tpu.memory_space<vmem>>, vector<8x32xf32>
    %c0_4 = arith.constant 0 : index
    %c0_5 = arith.constant 0 : index
    %5 = vector.load %arg4[%c0_4, %c0_5] : memref<16x32xf32, #tpu.memory_space<vmem>>, vector<16x32xf32>
    %cst = arith.constant dense<0.000000e+00> : vector<8x16xf32>
    %6 = tpu.matmul %3, %5, %cst {dimension_numbers = #tpu.dot_dimension_numbers<[1], [1], [0], [0], [0, 0, 1, 0], [], []>} : vector<8x32xf32>, vector<16x32xf32>, vector<8x16xf32> -> vector<8x16xf32>
    %7 = math.exp %6 : vector<8x16xf32>
    %cst_6 = arith.constant dense<0.000000e+00> : vector<8x16xf32>
    %8 = tpu.matmul %4, %5, %cst_6 {dimension_numbers = #tpu.dot_dimension_numbers<[1], [1], [0], [0], [0, 0, 1, 0], [], []>} : vector<8x32xf32>, vector<16x32xf32>, vector<8x16xf32> -> vector<8x16xf32>
    %9 = math.exp %8 : vector<8x16xf32>
    %c8_i32 = arith.constant 8 : i32
    %10 = arith.muli %arg0, %c8_i32 : i32
    %11 = tpu.iota {dimensions = array<i32: 0>} : vector<8x16xi32>
    %12 = vector.broadcast %10 : i32 to vector<8x16xi32>
    %13 = arith.addi %12, %11 : vector<8x16xi32>
    %c16_i32 = arith.constant 16 : i32
    %14 = arith.muli %arg1, %c16_i32 : i32
    %15 = tpu.iota {dimensions = array<i32: 1>} : vector<8x16xi32>
    %16 = vector.broadcast %14 : i32 to vector<8x16xi32>
    %17 = arith.addi %16, %15 : vector<8x16xi32>
    %18 = arith.cmpi eq, %17, %13 : vector<8x16xi32>
    %c24_i32 = arith.constant 24 : i32
    %19 = vector.broadcast %c24_i32 : i32 to vector<8x16xi32>
    %20 = arith.addi %13, %19 : vector<8x16xi32>
    %21 = arith.cmpi eq, %17, %20 : vector<8x16xi32>
    %c20_i32 = arith.constant 20 : i32
    %22 = vector.broadcast %c20_i32 : i32 to vector<8x16xi32>
    %23 = arith.cmpi sge, %17, %22 : vector<8x16xi32>
    %c24_i32_7 = arith.constant 24 : i32
    %24 = vector.broadcast %c24_i32_7 : i32 to vector<8x16xi32>
    %25 = arith.cmpi slt, %17, %24 : vector<8x16xi32>
    %26 = arith.andi %23, %25 : vector<8x16xi1>
    %c44_i32 = arith.constant 44 : i32
    %27 = vector.broadcast %c44_i32 : i32 to vector<8x16xi32>
    %28 = arith.cmpi sge, %17, %27 : vector<8x16xi32>
    %29 = arith.ori %26, %28 : vector<8x16xi1>
    %30 = arith.ori %18, %29 : vector<8x16xi1>
    %31 = arith.ori %21, %29 : vector<8x16xi1>
    %c0_8 = arith.constant 0 : index
    %c0_9 = arith.constant 0 : index
    %32 = vector.load %arg7[%c0_8, %c0_9] : memref<8x16xf32, #tpu.memory_space<vmem>>, vector<8x16xf32>
    %cst_10 = arith.constant 0.000000e+00 : f32
    %33 = vector.broadcast %cst_10 : f32 to vector<8x16xf32>
    %34 = arith.select %30, %33, %7 : vector<8x16xi1>, vector<8x16xf32>
    %35 = arith.addf %32, %34 : vector<8x16xf32>
    %c0_11 = arith.constant 0 : index
    %c0_12 = arith.constant 0 : index
    %36 = vector.load %arg7[%c0_11, %c0_12] : memref<8x16xf32, #tpu.memory_space<vmem>>, vector<8x16xf32>
    tpu.vector_store %arg7[%c0_11, %c0_12], %35 {strides = array<i32>} : memref<8x16xf32, #tpu.memory_space<vmem>>, vector<8x16xf32>,
    %c0_13 = arith.constant 0 : index
    %c0_14 = arith.constant 0 : index
    %37 = vector.load %arg8[%c0_13, %c0_14] : memref<8x16xf32, #tpu.memory_space<vmem>>, vector<8x16xf32>
    %cst_15 = arith.constant 0.000000e+00 : f32
    %38 = vector.broadcast %cst_15 : f32 to vector<8x16xf32>
    %39 = arith.select %31, %38, %9 : vector<8x16xi1>, vector<8x16xf32>
    %40 = arith.addf %37, %39 : vector<8x16xf32>
    %c0_16 = arith.constant 0 : index
    %c0_17 = arith.constant 0 : index
    %41 = vector.load %arg8[%c0_16, %c0_17] : memref<8x16xf32, #tpu.memory_space<vmem>>, vector<8x16xf32>
    tpu.vector_store %arg8[%c0_16, %c0_17], %40 {strides = array<i32>} : memref<8x16xf32, #tpu.memory_space<vmem>>, vector<8x16xf32>,
    %c2_i32 = arith.constant 2 : i32
    %42 = arith.cmpi eq, %arg1, %c2_i32 : i32
    %43 = arith.extui %42 : i1 to i32
    %c0_i32_18 = arith.constant 0 : i32
    %44 = arith.cmpi ne, %43, %c0_i32_18 : i32
    scf.if %44 {
      %45 = arith.mulf %3, %4 : vector<8x32xf32>
      %cst_19 = arith.constant dense<0.000000e+00> : vector<8xf32>
      %46 = vector.multi_reduction <add>, %45, %cst_19 [1] : vector<8x32xf32> to vector<8xf32>
      %47 = vector.shape_cast %46 : vector<8xf32> to vector<8x1xf32>
      %c0_20 = arith.constant 0 : index
      %c0_21 = arith.constant 0 : index
      %48 = vector.load %arg7[%c0_20, %c0_21] : memref<8x16xf32, #tpu.memory_space<vmem>>, vector<8x16xf32>
      %cst_22 = arith.constant dense<0.000000e+00> : vector<8xf32>
      %49 = vector.multi_reduction <add>, %48, %cst_22 [1] : vector<8x16xf32> to vector<8xf32>
      %50 = vector.shape_cast %49 : vector<8xf32> to vector<8x1xf32>
      %c0_23 = arith.constant 0 : index
      %c0_24 = arith.constant 0 : index
      %51 = vector.load %arg8[%c0_23, %c0_24] : memref<8x16xf32, #tpu.memory_space<vmem>>, vector<8x16xf32>
      %cst_25 = arith.constant dense<0.000000e+00> : vector<8xf32>
      %52 = vector.multi_reduction <add>, %51, %cst_25 [1] : vector<8x16xf32> to vector<8xf32>
      %53 = vector.shape_cast %52 : vector<8xf32> to vector<8x1xf32>
      %54 = math.log %50 : vector<8x1xf32>
      %55 = arith.subf %54, %47 : vector<8x1xf32>
      %c0_26 = arith.constant 0 : index
      %c0_27 = arith.constant 0 : index
      %56 = vector.load %arg5[%c0_26, %c0_27] : memref<8x1xf32, #tpu.memory_space<vmem>>, vector<8x1xf32>
      tpu.vector_store %arg5[%c0_26, %c0_27], %55 {strides = array<i32>} : memref<8x1xf32, #tpu.memory_space<vmem>>, vector<8x1xf32>,
      %57 = math.log %53 : vector<8x1xf32>
      %58 = arith.subf %57, %47 : vector<8x1xf32>
      %c0_28 = arith.constant 0 : index
      %c0_29 = arith.constant 0 : index
      %59 = vector.load %arg6[%c0_28, %c0_29] : memref<8x1xf32, #tpu.memory_space<vmem>>, vector<8x1xf32>
      tpu.vector_store %arg6[%c0_28, %c0_29], %58 {strides = array<i32>} : memref<8x1xf32, #tpu.memory_space<vmem>>, vector<8x1xf32>,
    } else {
    }
    return
  }
  func.func @transform_0(%arg0: i32, %arg1: i32) -> (i32, i32) {
    %c0_i32 = arith.constant 0 : i32
    %c0_i32_0 = arith.constant 0 : i32
    return %arg0, %c0_i32 : i32, i32
  }
  func.func @transform_1(%arg0: i32, %arg1: i32) -> (i32, i32) {
    %c3_i32 = arith.constant 3 : i32
    %0 = arith.addi %arg0, %c3_i32 : i32
    %c0_i32 = arith.constant 0 : i32
    %c0_i32_0 = arith.constant 0 : i32
    return %0, %c0_i32 : i32, i32
  }
  func.func @transform_2(%arg0: i32, %arg1: i32) -> (i32, i32) {
    %c0_i32 = arith.constant 0 : i32
    %c0_i32_0 = arith.constant 0 : i32
    return %arg1, %c0_i32 : i32, i32
  }
  func.func @transform_3(%arg0: i32, %arg1: i32) -> (i32, i32) {
    %c0_i32 = arith.constant 0 : i32
    %c0_i32_0 = arith.constant 0 : i32
    return %arg0, %c0_i32 : i32, i32
  }
  func.func @transform_4(%arg0: i32, %arg1: i32) -> (i32, i32) {
    %c0_i32 = arith.constant 0 : i32
    %c0_i32_0 = arith.constant 0 : i32
    return %arg0, %c0_i32 : i32, i32
  }
}

</mosaic_0001>

<bundles_post_ra>
// kernel: tpu_custom_call.1
= control target key start
LH: loop header
LB: loop body
LE: loop exit
PB: predicated region body
PF: predicated region fallthrough
CT: control target
= control target key end

     0   :  { %s641_s15 = smov 0   ;;  %s643_s16 = smov 0   ;;  %s728_s0 = inlined_call_operand.vmem [shape: f32[48,32], index: 0, kind: input, shape index: {}]   ;;  %s729_s1 = inlined_call_operand.vmem [shape: f32[48,32], index: 1, kind: input, shape index: {}]   ;;  %s730_s2 = inlined_call_operand.vmem [shape: f32[48,32], index: 2, kind: input, shape index: {}]   ;;  %s731_s3 = inlined_call_operand.vmem [shape: f32[24,1], index: 3, kind: output, shape index: {0}]   ;;  %s732_s4 = inlined_call_operand.vmem [shape: f32[24,1], index: 4, kind: output, shape index: {1}]  }
   0x1   :  { %s645_s17 = smov 0   ;;  %s647_s18 = smov 0  }
   0x2   :  { %s649_s19 = smov 0  }
   0x3 LB: > { %s24_s20 = sadd.s32 1, %s605_s17  ;;  %s27_s21 = sadd.s32 1, %s609_s18  ;;  %s613_s19 = sphi %s649_s19, %s15_s19   ;;  %s609_s18 = sphi %s647_s18, %s736_s18   ;;  %s605_s17 = sphi %s645_s17, %s735_s17   ;;  %s601_s16 = sphi %s643_s16, %s734_s16   ;;  %s597_s15 = sphi %s641_s15, %s733_s15  }
   0x4   : > { %p25_p0 = scmp.ge.s32.totalorder %s24_s20, 3  ;;  %p507_p1 = scmp.ge.s32.totalorder %s613_s19, 1 }
   0x5   : > { %p200_p2 = scmp.lt.s32.totalorder %s613_s19, 10 }
   0x6   : > { %s738_s20 = smov (%p25_p0, %s24_s20), 0  ;;  %s740_s21 = smov (!%p25_p0, %s27_s21), %s609_s18 }
   0x7   : > { %p201_p3 = pnand %p507_p1, %p200_p2  ;;  %p29_p4 = scmp.ge.s32.totalorder %s740_s21, 3 }
   0x8   : > { %p238_p5 = scmp.lt.s32.totalorder (!%p201_p3), %s601_s16, 5  ;;  %s242_s22 = sadd.s32 (!%p201_p3), 3, %s601_s16 }
   0x9   : > { %s742_s21 = smov (%p29_p4, %s740_s21), 0  ;;  %204 = sbr.rel (%p201_p3) target bundleno = 318 (0x13e), region = 32 }
   0xa   : > { %p243_p6 = scmp.lt.s32.totalorder (!%p201_p3), %s242_s22, 5  ;;  %s510_s23 = sshll.u32 (!%p201_p3), %s597_s15, 1 }
   0xb   : > { %p249_p7 = scmp.lt.s32.totalorder (!%p201_p3), %s510_s23, 5  ;;  %p254_p8 = scmp.lt.s32.totalorder (!%p201_p3), %s601_s16, 2 }
   0xc   : > { %p514_p9 = scmp.ne.s32.totalorder (!%p201_p3), %s597_s15, 0 }
   0xe   : > { %s239_s24 = scalar_select %p238_p5, %s601_s16, 5 }
   0xf   : > { %s744_s22 = smov (!%p243_p6, %s242_s22), 5  ;;  %s746_s23 = smov (!%p249_p7, %s510_s23), 5 }
  0x10   : > { %s508_s25 = sshll.u32 %s239_s24, 3  ;;  %s509_s29 = sshll.u32 %s744_s22, 3 }
  0x11   : > { %s241_s28 = scalar_lea.vmem %s728_s0, %s508_s25  ;;  %s246_s6 = scalar_lea.vmem %s729_s1, %s509_s29 }
  0x12   : > { %s255_s7 = scalar_select %p254_p8, %s601_s16, 2 }
  0x13   : > { %s511_s8 = sshll.u32 %s746_s23, 3  ;;  %265 = sbr.rel (%p514_p9) target bundleno = 27 (0x1b), region = 36 }
  0x14   : > { %s252_s11 = scalar_lea.vmem %s730_s2, %s511_s8  ;;  %s512_s12 = sshll.u32 %s255_s7, 3 }
  0x15   : > { %s693_s24 = scalar_lea.vmem %s731_s3, %s512_s12  ;;  %s698_s26 = scalar_lea.vmem %s732_s4, %s512_s12 }
  0x18   : > { %vm266_vm0 = vcmask 130048   ;;  %v615_v0 = vmov 0.0  }
  0x19   : > { %267 = vst.msk [vmem:[#allocation2] sm:$0xff] %vm266_vm0, %v615_v0 }
  0x1a   : > { %268 = vst.msk [vmem:[#allocation3] sm:$0xff] %vm266_vm0, %v615_v0 }
  0x1b PF: > { %v272_v1 = vld [vmem:[%s252_s11 + $0x8] sm:$0xff]  ;;  %vm273_vm1 = vcmask 261120   ;;  %v271_v2 = vld [vmem:[%s252_s11] sm:$0xff]  ;;  %v331_v5 = vlaneseq  ;;  %s522_s23 = sshll.u32 %s597_s15, 4  ;;  %s521_s27 = sshll.u32 %s601_s16, 3  ;;  %vm353_vm11 = vcmask 130048  }
  0x1c   : > { %515 = vmatpush.xpose.msk.msra.mxu0 %vm273_vm1, %v272_v1  ;;  %518 = vmatpush.xpose.msk.msra.mxu1 %vm273_vm1, %v272_v1  ;;  %v269_v3 = vld [vmem:[%s241_s28] sm:$0xff]  ;;  %v338_v7 = vstv %s522_s23  ;;  %v333_v9 = vstv %s521_s27  ;;  %p523_p10 = scmp.ne.s32.totalorder %s597_s15, 2 }
  0x1d   : > { %v270_v4 = vld [vmem:[%s246_s6] sm:$0xff]  ;;  %v337_v6 = vand.u32 127, %v331_v5  ;;  %v332_v8 = vshrl.u32 %v331_v5, 7 }
  0x1f   : > { %v339_v10 = vadd.s32 %v338_v7, %v337_v6  ;;  %v334_v11 = vadd.s32 %v333_v9, %v332_v8 }
  0x20   : > { %516 = vmatpush.xpose.msk.msra.mxu0 %vm273_vm1, %v271_v2  ;;  %519 = vmatpush.xpose.msk.msra.mxu1 %vm273_vm1, %v271_v2  ;;  %v350_v17 = vld [vmem:[#allocation2] sm:$0xff] }
  0x21   : > { %vm343_vm2 = vcmp.ge.s32.totalorder %v339_v10, 20  ;;  %vm344_vm3 = vcmp.lt.s32.totalorder %v339_v10, 24  ;;  %vm346_vm5 = vcmp.ge.s32.totalorder %v339_v10, 44  ;;  %v341_v16 = vadd.s32 24, %v334_v11  ;;  %v355_v19 = vld [vmem:[#allocation3] sm:$0xff] }
  0x22   : > { %vm345_vm4 = vmand %vm343_vm2, %vm344_vm3  ;;  %vm340_vm6 = vcmp.eq.s32.totalorder %v339_v10, %v334_v11 }
  0x23   : > { %517 = vmatmul.msk.f32.vlgmr.msra.gmra.mxu0 %vm273_vm1, %v269_v3  ;;  %520 = vmatmul.msk.f32.vlgmr.msra.gmra.mxu1 %vm273_vm1, %v270_v4  ;;  %vm347_vm7 = vmor %vm345_vm4, %vm346_vm5  ;;  %vm342_vm8 = vcmp.eq.s32.totalorder %v339_v10, %v341_v16 }
  0x24   : > { %vm348_vm9 = vmor %vm340_vm6, %vm347_vm7 }
  0x25   : > { %vm349_vm10 = vmor %vm342_vm8, %vm347_vm7 }
  0xa0   : > { %v300_v12 = vpop.f32.mrf.mxu0  ;;  %v325_v13 = vpop.f32.mrf.mxu1 }
  0xa1   : > { %v303_v14 = vmul.f32 1.442695, %v300_v12  ;;  %v328_v15 = vmul.f32 1.442695, %v325_v13 }
  0xa3   : > { %567 = vpow2.f32 %v303_v14 }
  0xa4   : > { %569 = vpow2.f32 %v328_v15 }
  0xa9   : > { %v568_v18 = vpop.eup %567 }
  0xaa   : > { %v570_v20 = vpop.eup %569  ;;  %v351_v21 = vsel %vm348_vm9, 0.0, %v568_v18  ;;  %362 = sbr.rel (%p523_p10) target bundleno = 318 (0x13e), region = 40 }
  0xab   : > { %v352_v22 = vadd.f32 %v351_v21, %v350_v17  ;;  %v356_v23 = vsel %vm349_vm10, 0.0, %v570_v20 }
  0xac   : > { %v357_v24 = vadd.f32 %v356_v23, %v355_v19 }
  0xad   : > { %354 = vst.msk [vmem:[#allocation2] sm:$0xff] %vm353_vm11, %v352_v22 }
  0xae   : > { %358 = vst.msk [vmem:[#allocation3] sm:$0xff] %vm353_vm11, %v357_v24 }
  0xaf   : > { %v363_v26 = vmul.f32 %v270_v4, %v269_v3  ;;  %vm378_vm12 = vcmask 7168  }
  0xb1   : > { %v364_v28 = vsel %vm273_vm1, %v363_v26, 0.0 }
  0xb2   : > { %365 = vadd.xlane.f32.xlu1 %v364_v28 }
  0xb4   : > { %v367_v25 = vld [vmem:[#allocation2] sm:$0xff] }
  0xb5   : > { %v368_v27 = vsel %vm353_vm11, %v367_v25, 0.0  ;;  %v371_v29 = vld [vmem:[#allocation3] sm:$0xff] }
  0xb6   : > { %369 = vadd.xlane.f32.xlu0 %v368_v27  ;;  %v372_v30 = vsel %vm353_vm11, %v371_v29, 0.0 }
  0xbe   : > { %373 = vadd.xlane.f32.xlu0 %v372_v30 }
 0x125   : > { %v366_v33 = vpop.xlane.xlu1 %365 }
 0x129   : > { %v370_v31 = vpop.xlane.xlu0 %369 }
 0x12a   : > { %571 = vlog2.f32 %v370_v31 }
 0x130   : > { %v572_v32 = vpop.eup %571 }
 0x131   : > { %v376_v34 = vmul.f32 0.6931472, %v572_v32  ;;  %v374_v35 = vpop.xlane.xlu0 %373 }
 0x132   : > { %573 = vlog2.f32 %v374_v35 }
 0x133   : > { %v377_v36 = vsub.f32 %v376_v34, %v366_v33 }
 0x135   : > { %379 = vst.msk [vmem:[%s693_s24] sm:$0xff] %vm378_vm12, %v377_v36 }
 0x138   : > { %v574_v37 = vpop.eup %573 }
 0x139   : > { %v381_v38 = vmul.f32 0.6931472, %v574_v37 }
 0x13b   : > { %v382_v39 = vsub.f32 %v381_v38, %v366_v33 }
 0x13d   : > { %383 = vst.msk [vmem:[%s698_s26] sm:$0xff] %vm378_vm12, %v382_v39 }
 0x13e PF: > { %s15_s19 = sadd.s32 1, %s613_s19   ;;  %s733_s15 = smov %s605_s17 }
 0x13f   : > { %p12_p11 = scmp.ge.s32.totalorder %s15_s19, 11   ;;  %s734_s16 = smov %s609_s18 }
 0x140   : > { %s735_s17 = smov %s738_s20  ;;  %s736_s18 = smov %s742_s21 }
 0x141   :  { %14 = sbr.rel (!%p12_p11) target bundleno = 3 (0x3), region = 88 }

</bundles_post_ra>
